<compile_context>
chip_gen: v7x
topology: tpu7x:2x2x1
jax: 0.10.0
libtpu: 0.0.40
codegen_flags: <defaults>
</compile_context>

<pallas_src>
import functools

import jax
import jax.numpy as jnp
from jax.experimental import pallas as pl
from jax.experimental.pallas import tpu as pltpu


def _round_up(a, b):
    return -(-a // b) * b


def actor_critic_kernel(x_ref, w1_ref, b1_ref, w2_ref, b2_ref, out_ref):
    """Fused actor+critic MLP: two MXU matmuls, narrow f32 output store."""
    x = x_ref[...]
    # Layer 1 (critic hidden in lanes [0:H], actor hidden in lanes [H:2H]).
    # f32 accumulator + f32 bias/ReLU (v5e VPU has no bf16 elementwise).
    h = jnp.dot(x, w1_ref[...], preferred_element_type=jnp.float32) + b1_ref[...]
    h = jnp.maximum(h, 0.0)
    # Layer 2 (block-structured weights): mu -> lanes [0:A], value -> lane A.
    out = (
        jnp.dot(h.astype(w2_ref.dtype), w2_ref[...],
                preferred_element_type=jnp.float32)
        + b2_ref[...]
    )
    # Store only the useful lanes (masked vst, but HBM bytes are what bind).
    out_ref[...] = out[:, : out_ref.shape[1]].astype(out_ref.dtype)


def pack_params(params, compute_dtype):
    """Pack actor+critic weights into fused, lane-padded matrices.

    Returns (W1 [S, Hp], b1 [1, Hp], W2 [Hp, OUTP], b2 [1, OUTP]) with
      Hp   = round_up(2*hidden, 128)
      OUTP = round_up(action_dim + 1, 128)
    mu occupies output lanes [0:A], value occupies output lane A.
    """
    wc1, bc1, wc2, bc2 = params["wc1"], params["bc1"], params["wc2"], params["bc2"]
    wa1, ba1, wa2, ba2 = params["wa1"], params["ba1"], params["wa2"], params["ba2"]
    S, H = wc1.shape
    A = wa2.shape[1]
    Hp = _round_up(2 * H, 128)
    OUTP = _round_up(A + 1, 128)

    W1 = jnp.zeros((S, Hp), jnp.float32)
    W1 = W1.at[:, :H].set(wc1).at[:, H:2 * H].set(wa1)
    b1 = jnp.zeros((1, Hp), jnp.float32)
    b1 = b1.at[:, :H].set(bc1).at[:, H:2 * H].set(ba1)

    W2 = jnp.zeros((Hp, OUTP), jnp.float32)
    W2 = W2.at[H:2 * H, :A].set(wa2)        # actor hidden  -> mu lanes [0:A]
    W2 = W2.at[:H, A:A + 1].set(wc2)        # critic hidden -> value lane A
    b2 = jnp.zeros((1, OUTP), jnp.float32)
    b2 = b2.at[:, :A].set(ba2).at[:, A:A + 1].set(bc2)

    # Weights cast to compute dtype (bf16 recommended); biases stay f32 and
    # are added on the f32 accumulator inside the kernel.
    return W1.astype(compute_dtype), b1, W2.astype(compute_dtype), b2


def actor_critic_forward(x, params, *, max_batch_tile=2048,
                         compute_dtype=jnp.bfloat16):
    """Run the fused ActorCritic forward pass.

    Returns (mu [B, A], std [1, A], value [B, 1]).  std is batch-invariant so
    it is returned unbroadcast (Normal(mu, std) broadcasts where consumed).
    compute_dtype=jnp.float32 matches the reference to ~1e-6; the default
    bfloat16 halves input DMA/VMEM and is MXU-native on v6e/v7x.
    """
    B, S = x.shape
    A = params["wa2"].shape[1]

    W1, b1, W2, b2 = pack_params(params, compute_dtype)
    Hp = W1.shape[1]
    OUTP = W2.shape[1]
    OUTN = _round_up(A + 1, 8)            # narrow HBM output (useful lanes only)

    # Batch tiling: bf16 packs 16 sublanes/vreg, f32 packs 8.
    align = 16 if compute_dtype == jnp.bfloat16 else 8
    n_tiles = max(1, -(-B // max_batch_tile))
    # v7x megacore: with a single grid step one TensorCore idles; split when
    # there is enough real work for two tiles.
    if n_tiles == 1 and B >= 2 * align:
        n_tiles = 2
    TB = _round_up(-(-B // n_tiles), align)   # balanced tile -> minimal padding
    B_pad = _round_up(B, TB)

    x_p = x.astype(compute_dtype)
    if B_pad != B:
        x_p = jnp.pad(x_p, ((0, B_pad - B), (0, 0)))

    grid = (B_pad // TB,)

    out = pl.pallas_call(
        actor_critic_kernel,
        out_shape=jax.ShapeDtypeStruct((B_pad, OUTN), jnp.float32),
        grid=grid,
        in_specs=[
            pl.BlockSpec((TB, S), lambda i: (i, 0)),       # x tile (pipelined)
            pl.BlockSpec((S, Hp), lambda i: (0, 0)),       # fused W1 (resident)
            pl.BlockSpec((1, Hp), lambda i: (0, 0)),       # fused b1 (resident)
            pl.BlockSpec((Hp, OUTP), lambda i: (0, 0)),    # fused W2 (resident)
            pl.BlockSpec((1, OUTP), lambda i: (0, 0)),     # fused b2 (resident)
        ],
        # Narrow output: block last dim == full array last dim (legal < 128).
        out_specs=pl.BlockSpec((TB, OUTN), lambda i: (i, 0)),
        compiler_params=pltpu.CompilerParams(
            dimension_semantics=("parallel",),   # shard batch tiles across TCs
            vmem_limit_bytes=32 * 1024 * 1024,   # well inside v7x 64 MiB VMEM
        ),
    )(x_p, W1, b1, W2, b2)

    mu = out[:B, :A]
    value = out[:B, A:A + 1]
    std = jnp.exp(params["log_std"])             # (1, A), batch-invariant
    return mu, std, value


def init_params(key, state_dim, action_dim, hidden_size, std=0.0):
    """Mirrors PyTorch init_weights: W ~ Normal(0, 0.1), b = 0.1,
    log_std = ones(action_dim) * std."""
    k1, k2, k3, k4 = jax.random.split(key, 4)
    n = lambda k, shape: 0.1 * jax.random.normal(k, shape, dtype=jnp.float32)
    return {
        # critic
        "wc1": n(k1, (state_dim, hidden_size)),
        "bc1": jnp.full((1, hidden_size), 0.1, jnp.float32),
        "wc2": n(k2, (hidden_size, 1)),
        "bc2": jnp.full((1, 1), 0.1, jnp.float32),
        # actor
        "wa1": n(k3, (state_dim, hidden_size)),
        "ba1": jnp.full((1, hidden_size), 0.1, jnp.float32),
        "wa2": n(k4, (hidden_size, action_dim)),
        "ba2": jnp.full((1, action_dim), 0.1, jnp.float32),
        # log_std parameter
        "log_std": jnp.full((1, action_dim), std, jnp.float32),
    }


def reference_forward(x, p):
    h_c = jnp.maximum(x @ p["wc1"] + p["bc1"], 0.0)
    value = h_c @ p["wc2"] + p["bc2"]
    h_a = jnp.maximum(x @ p["wa1"] + p["ba1"], 0.0)
    mu = h_a @ p["wa2"] + p["ba2"]
    std = jnp.exp(p["log_std"])
    return mu, std, value


if __name__ == "__main__":
    state_dim, action_dim, hidden_size, batch = 8, 4, 32, 2

    key = jax.random.PRNGKey(0)
    k_x, k_p = jax.random.split(key)
    x = jax.random.normal(k_x, (batch, state_dim), dtype=jnp.float32)
    params = init_params(k_p, state_dim, action_dim, hidden_size, std=0.0)

    mu_ref, std_ref, value_ref = reference_forward(x, params)

    # f32 compute path: matches the reference to ~1e-6.
    fwd_f32 = jax.jit(functools.partial(actor_critic_forward,
                                        compute_dtype=jnp.float32))
    mu, std, value = jax.block_until_ready(fwd_f32(x, params))
    assert mu.shape == (batch, action_dim)
    assert std.shape == (1, action_dim)
    assert value.shape == (batch, 1)
    assert jnp.allclose(mu, mu_ref, atol=1e-5, rtol=1e-5)
    assert jnp.allclose(std, std_ref, atol=1e-5, rtol=1e-5)
    assert jnp.allclose(value, value_ref, atol=1e-5, rtol=1e-5)

    # Default bf16 compute path (recommended on v6e/v7x): bf16-level tolerance.
    fwd_bf16 = jax.jit(functools.partial(actor_critic_forward))
    mu_b, std_b, value_b = jax.block_until_ready(fwd_bf16(x, params))
    assert mu_b.shape == (batch, action_dim)
    assert std_b.shape == (1, action_dim)
    assert value_b.shape == (batch, 1)
    assert jnp.allclose(mu_b, mu_ref, atol=2e-2, rtol=2e-2)
    assert jnp.allclose(std_b, std_ref, atol=1e-5, rtol=1e-5)
    assert jnp.allclose(value_b, value_ref, atol=2e-2, rtol=2e-2)

    # TODO(synk): torch.distributions.Normal has no Pallas equivalent; the
    # distribution is represented by returning (mu, std).

    print("KERNEL_OK")
</pallas_src>

<mosaic_0001>
module attributes {stable_mosaic.version = 11 : i64} {
  func.func @actor_critic_kernel(%arg0: i32, %arg1: memref<8x8xf32, #tpu.memory_space<vmem>>, %arg2: memref<8x128xf32, #tpu.memory_space<vmem>>, %arg3: memref<1x128xf32, #tpu.memory_space<vmem>>, %arg4: memref<128x128xf32, #tpu.memory_space<vmem>>, %arg5: memref<1x128xf32, #tpu.memory_space<vmem>>, %arg6: memref<8x8xf32, #tpu.memory_space<vmem>>) attributes {dimension_semantics = [#tpu.dimension_semantics<parallel>], iteration_bounds = array<i64: 1>, scalar_prefetch = 0 : i64, scratch_operands = 0 : i64, tpu.core_type = #tpu.core_type<tc>, window_params = [{transform_indices = @transform_0, window_bounds = array<i64: 8, 8>}, {pipeline_mode = #tpu.pipeline_mode<synchronous>, transform_indices = @transform_1, window_bounds = array<i64: 8, 128>}, {pipeline_mode = #tpu.pipeline_mode<synchronous>, transform_indices = @transform_2, window_bounds = array<i64: 1, 128>}, {pipeline_mode = #tpu.pipeline_mode<synchronous>, transform_indices = @transform_3, window_bounds = array<i64: 128, 128>}, {pipeline_mode = #tpu.pipeline_mode<synchronous>, transform_indices = @transform_4, window_bounds = array<i64: 1, 128>}, {transform_indices = @transform_5, window_bounds = array<i64: 8, 8>}]} {
    %c0 = arith.constant 0 : index
    %c0_0 = arith.constant 0 : index
    %0 = vector.load %arg1[%c0, %c0_0] : memref<8x8xf32, #tpu.memory_space<vmem>>, vector<8x8xf32>
    %c0_1 = arith.constant 0 : index
    %c0_2 = arith.constant 0 : index
    %1 = vector.load %arg2[%c0_1, %c0_2] : memref<8x128xf32, #tpu.memory_space<vmem>>, vector<8x128xf32>
    %cst = arith.constant dense<0.000000e+00> : vector<8x128xf32>
    %2 = tpu.matmul %0, %1, %cst {dimension_numbers = #tpu.dot_dimension_numbers<[1], [0], [0], [1], [0, 0, 1, 1], [], []>} : vector<8x8xf32>, vector<8x128xf32>, vector<8x128xf32> -> vector<8x128xf32>
    %c0_3 = arith.constant 0 : index
    %c0_4 = arith.constant 0 : index
    %3 = vector.load %arg3[%c0_3, %c0_4] : memref<1x128xf32, #tpu.memory_space<vmem>>, vector<1x128xf32>
    %4 = vector.broadcast %3 : vector<1x128xf32> to vector<8x128xf32>
    %5 = arith.addf %2, %4 : vector<8x128xf32>
    %cst_5 = arith.constant 0.000000e+00 : f32
    %6 = vector.broadcast %cst_5 : f32 to vector<8x128xf32>
    %7 = arith.maximumf %5, %6 : vector<8x128xf32>
    %c0_6 = arith.constant 0 : index
    %c0_7 = arith.constant 0 : index
    %8 = vector.load %arg4[%c0_6, %c0_7] : memref<128x128xf32, #tpu.memory_space<vmem>>, vector<128x128xf32>
    %cst_8 = arith.constant dense<0.000000e+00> : vector<8x128xf32>
    %9 = tpu.matmul %7, %8, %cst_8 {dimension_numbers = #tpu.dot_dimension_numbers<[1], [0], [0], [1], [0, 0, 1, 1], [], []>} : vector<8x128xf32>, vector<128x128xf32>, vector<8x128xf32> -> vector<8x128xf32>
    %c0_9 = arith.constant 0 : index
    %c0_10 = arith.constant 0 : index
    %10 = vector.load %arg5[%c0_9, %c0_10] : memref<1x128xf32, #tpu.memory_space<vmem>>, vector<1x128xf32>
    %11 = vector.broadcast %10 : vector<1x128xf32> to vector<8x128xf32>
    %12 = arith.addf %9, %11 : vector<8x128xf32>
    %13 = vector.extract_strided_slice %12 {offsets = [0, 0], sizes = [8, 8], strides = [1, 1]} : vector<8x128xf32> to vector<8x8xf32>
    %c0_11 = arith.constant 0 : index
    %c0_12 = arith.constant 0 : index
    %14 = vector.load %arg6[%c0_11, %c0_12] : memref<8x8xf32, #tpu.memory_space<vmem>>, vector<8x8xf32>
    tpu.vector_store %arg6[%c0_11, %c0_12], %13 {strides = array<i32>} : memref<8x8xf32, #tpu.memory_space<vmem>>, vector<8x8xf32>,
    return
  }
  func.func @transform_0(%arg0: i32) -> (i32, i32) {
    %c0_i32 = arith.constant 0 : i32
    %c0_i32_0 = arith.constant 0 : i32
    return %arg0, %c0_i32 : i32, i32
  }
  func.func @transform_1(%arg0: i32) -> (i32, i32) {
    %c0_i32 = arith.constant 0 : i32
    %c0_i32_0 = arith.constant 0 : i32
    %c0_i32_1 = arith.constant 0 : i32
    return %c0_i32, %c0_i32_0 : i32, i32
  }
  func.func @transform_2(%arg0: i32) -> (i32, i32) {
    %c0_i32 = arith.constant 0 : i32
    %c0_i32_0 = arith.constant 0 : i32
    %c0_i32_1 = arith.constant 0 : i32
    return %c0_i32, %c0_i32_0 : i32, i32
  }
  func.func @transform_3(%arg0: i32) -> (i32, i32) {
    %c0_i32 = arith.constant 0 : i32
    %c0_i32_0 = arith.constant 0 : i32
    %c0_i32_1 = arith.constant 0 : i32
    return %c0_i32, %c0_i32_0 : i32, i32
  }
  func.func @transform_4(%arg0: i32) -> (i32, i32) {
    %c0_i32 = arith.constant 0 : i32
    %c0_i32_0 = arith.constant 0 : i32
    %c0_i32_1 = arith.constant 0 : i32
    return %c0_i32, %c0_i32_0 : i32, i32
  }
  func.func @transform_5(%arg0: i32) -> (i32, i32) {
    %c0_i32 = arith.constant 0 : i32
    %c0_i32_0 = arith.constant 0 : i32
    return %arg0, %c0_i32 : i32, i32
  }
}

</mosaic_0001>

<bundles_post_ra>
// kernel: actor_critic_forward.1
= control target key start
LH: loop header
LB: loop body
LE: loop exit
PB: predicated region body
PF: predicated region fallthrough
CT: control target
= control target key end

     0   :  { %vm29_vm0 = vcmask 64512   ;;  %v291_v0 = vmov 0.0   ;;  %vm292_vm1 = vmmov 0   ;;  %v293_v4 = vmov 0.0|0.0   ;;  %s389_s1 = inlined_call_operand.vmem [shape: f32[8,128], index: 1, kind: input, shape index: {}]   ;;  %s390_s0 = inlined_call_operand.vmem [shape: f32[8,8], index: 0, kind: input, shape index: {}]   ;;  %s391_s3 = inlined_call_operand.vmem [shape: f32[128,128], index: 3, kind: input, shape index: {}]   ;;  %s392_s2 = inlined_call_operand.vmem [shape: f32[1,128], index: 2, kind: input, shape index: {}]   ;;  %s393_s4 = inlined_call_operand.vmem [shape: f32[1,128], index: 4, kind: input, shape index: {}]   ;;  %s394_s5 = inlined_call_operand.vmem [shape: f32[8,8], index: 5, kind: output, shape index: {}]  }
   0x1   :  { %224 = vmatprep.subr.mxu0 %v291_v0  ;;  %v21_v1 = vld [vmem:[%s389_s1] sm:$0xff]  ;;  %226 = vmatprep.mubr.msk.f32.mxu0 %vm292_vm1, %v291_v0  ;;  %v105_v5 = vld [vmem:[%s391_s3 + $0x8] sm:$0xff]  ;;  %v106_v6 = vld [vmem:[%s391_s3 + $0x10] sm:$0xff] }
   0x2   :  { %v20_v2 = vld [vmem:[%s390_s0] sm:$0xff]  ;;  %225 = vmatpush3.msra.mxu0 %v21_v1  ;;  %264 = vmatprep.subr.bf16.mxu1 %v293_v4  ;;  %v107_v7 = vld [vmem:[%s391_s3 + $0x18] sm:$0xff]  ;;  %v109_v11 = vld [vmem:[%s391_s3 + $0x28] sm:$0xff] }
   0x3   :  { %v104_v3 = vld [vmem:[%s391_s3] sm:$0xff]  ;;  %227 = vmatmul.mubr.msk.f32.vlgmr.msra.gmra.mrb[0].mxu0 %vm29_vm0, %v20_v2  ;;  %261 = vmatprep.mubr.msk.f32.mxu1 %vm292_vm1, %v291_v0  ;;  %v268_v9 = vpack.c.bf16 %v107_v7, %v106_v6  ;;  %v110_v13 = vld [vmem:[%s391_s3 + $0x30] sm:$0xff]  ;;  %v111_v14 = vld [vmem:[%s391_s3 + $0x38] sm:$0xff] }
   0x4   :  { %v265_v8 = vpack.c.bf16 %v105_v5, %v104_v3  ;;  %v108_v10 = vld [vmem:[%s391_s3 + $0x20] sm:$0xff]  ;;  %v274_v15 = vpack.c.bf16 %v111_v14, %v110_v13  ;;  %v113_v17 = vld [vmem:[%s391_s3 + $0x48] sm:$0xff]  ;;  %v114_v19 = vld [vmem:[%s391_s3 + $0x50] sm:$0xff] }
   0x5   :  { %v271_v12 = vpack.c.bf16 %v109_v11, %v108_v10  ;;  %v112_v16 = vld [vmem:[%s391_s3 + $0x40] sm:$0xff]  ;;  %v115_v20 = vld [vmem:[%s391_s3 + $0x58] sm:$0xff]  ;;  %v117_v23 = vld [vmem:[%s391_s3 + $0x68] sm:$0xff] }
   0x6   :  { %266 = vmatpush3.bf16.msra.mxu1 %v265_v8  ;;  %v277_v18 = vpack.c.bf16 %v113_v17, %v112_v16  ;;  %v280_v21 = vpack.c.bf16 %v115_v20, %v114_v19  ;;  %v116_v22 = vld [vmem:[%s391_s3 + $0x60] sm:$0xff]  ;;  %v118_v25 = vld [vmem:[%s391_s3 + $0x70] sm:$0xff]  ;;  %v119_v26 = vld [vmem:[%s391_s3 + $0x78] sm:$0xff] }
   0x7   :  { %267 = vmatprep.subr.bf16.mxu1 %v293_v4  ;;  %v283_v24 = vpack.c.bf16 %v117_v23, %v116_v22  ;;  %v286_v27 = vpack.c.bf16 %v119_v26, %v118_v25  ;;  %v202_v28 = vld [vmem:[%s392_s2] ss:$0 sm:$0xff] }
   0x8   :  { %v204_v33 = vld [vmem:[%s393_s4] ss:$0 sm:$0xff] }
   0xa   :  { %269 = vmatpush3.bf16.msra.mxu1 %v268_v9 }
   0xb   :  { %270 = vmatprep.subr.bf16.mxu1 %v293_v4 }
   0xe   :  { %272 = vmatpush3.bf16.msra.mxu1 %v271_v12 }
   0xf   :  { %273 = vmatprep.subr.bf16.mxu1 %v293_v4 }
  0x12   :  { %275 = vmatpush3.bf16.msra.mxu1 %v274_v15 }
  0x13   :  { %276 = vmatprep.subr.bf16.mxu1 %v293_v4 }
  0x16   :  { %278 = vmatpush3.bf16.msra.mxu1 %v277_v18 }
  0x17   :  { %279 = vmatprep.subr.bf16.mxu1 %v293_v4 }
  0x1a   :  { %281 = vmatpush3.bf16.msra.mxu1 %v280_v21 }
  0x1b   :  { %282 = vmatprep.subr.bf16.mxu1 %v293_v4 }
  0x1e   :  { %284 = vmatpush3.bf16.msra.mxu1 %v283_v24 }
  0x1f   :  { %285 = vmatprep.subr.bf16.mxu1 %v293_v4 }
  0x22   :  { %287 = vmatpush3.bf16.msra.mxu1 %v286_v27 }
  0xd6   :  { %v99_v29 = vpop.f32.mrb[0].mxu0 }
  0xd7   :  { %v100_v30 = vadd.f32 %v202_v28, %v99_v29  ;;  %v228_v31 = vpop.f32.mrb[1].mxu0 }
  0xd9   :  { %v103_v32 = vmax.f32 %v100_v30, 0.0 }
  0xdb   :  { %262 = vmatmul.mubr.f32.vlgmr.msra.gmra.mrb[0].mxu1 %v103_v32 }
 0x1ae   :  { %v193_v34 = vpop.f32.mrb[0].mxu1 }
 0x1af   :  { %v194_v35 = vadd.f32 %v204_v33, %v193_v34  ;;  %v263_v36 = vpop.f32.mrb[1].mxu1 }
 0x1b1   :  { %197 = vst.msk [vmem:[%s394_s5] sm:$0xff] %vm29_vm0, %v194_v35 }

</bundles_post_ra>
